<compile_context>
chip_gen: v7x
topology: tpu7x:2x2x1
jax: 0.10.0
libtpu: 0.0.40
codegen_flags: <defaults>
</compile_context>

<pallas_src>
import math
import functools

import numpy as np
import jax
import jax.numpy as jnp
from jax import lax
from jax.experimental import pallas as pl
from jax.experimental.pallas import tpu as pltpu


# --------------------------------------------------------------------------------------
# Pallas kernel
# --------------------------------------------------------------------------------------
def _csa_kernel(x_ref, wq_ref, bq_ref, wk_ref, bk_ref, wv_ref, bv_ref,
                wo_ref, bo_ref, o_ref, k_s, v_s, ctx_s,
                *, num_heads, scale, q_tile):
    T, C = x_ref.shape
    Dh = C // num_heads
    qi = pl.program_id(1)
    neg = jnp.float32(-1e30)

    # ---- K/V projection: once per batch element, persisted in bf16 VMEM scratch
    #      across the sequential query-tile axis.  [R1, R5]
    @pl.when(qi == 0)
    def _():
        xf = x_ref[...]                                                     # (T, C) bf16
        k = jnp.dot(xf, wk_ref[...], preferred_element_type=jnp.float32) + bk_ref[...]
        v = jnp.dot(xf, wv_ref[...], preferred_element_type=jnp.float32) + bv_ref[...]
        k_s[...] = k.astype(jnp.bfloat16)
        v_s[...] = v.astype(jnp.bfloat16)

    # ---- Q projection for this query tile only (score scale folded into q).
    q0 = pl.multiple_of(qi * q_tile, q_tile)
    xq = x_ref[pl.ds(q0, q_tile), :]                                        # (TQ, C) bf16
    q = jnp.dot(xq, wq_ref[...], preferred_element_type=jnp.float32) + bq_ref[...]
    q_bf = (q * scale).astype(jnp.bfloat16)

    row = lax.broadcasted_iota(jnp.int32, (q_tile, q_tile), 0) + q0         # global q idx
    col0 = lax.broadcasted_iota(jnp.int32, (q_tile, q_tile), 1)

    # ---- Flash-style online softmax over the causal KV prefix: blocks 0..qi. [R2]
    def kv_step(j, carry):
        ms, ls, accs = carry
        c0 = pl.multiple_of(j * q_tile, q_tile)
        k_blk = k_s[pl.ds(c0, q_tile), :]                                   # (TK, C) bf16
        v_blk = v_s[pl.ds(c0, q_tile), :]
        # Only the diagonal block is actually masked; interior blocks are all-valid.
        valid = row >= (col0 + c0)
        new_ms, new_ls, new_accs = [], [], []
        for h in range(num_heads):                       # short static head loop
            sl = slice(h * Dh, (h + 1) * Dh)
            s = lax.dot_general(q_bf[:, sl], k_blk[:, sl],
                                (((1,), (1,)), ((), ())),
                                preferred_element_type=jnp.float32)         # (TQ, TK)
            s = jnp.where(valid, s, neg)
            m_new = jnp.maximum(ms[h], jnp.max(s, axis=-1, keepdims=True))
            alpha = jnp.exp(ms[h] - m_new)
            p = jnp.exp(s - m_new)
            l_new = alpha * ls[h] + jnp.sum(p, axis=-1, keepdims=True)
            acc_new = alpha * accs[h] + jnp.dot(p.astype(jnp.bfloat16), v_blk[:, sl],
                                                preferred_element_type=jnp.float32)
            new_ms.append(m_new)
            new_ls.append(l_new)
            new_accs.append(acc_new)
        return tuple(new_ms), tuple(new_ls), tuple(new_accs)

    init = (tuple(jnp.full((q_tile, 1), -1e30, jnp.float32) for _ in range(num_heads)),
            tuple(jnp.zeros((q_tile, 1), jnp.float32) for _ in range(num_heads)),
            tuple(jnp.zeros((q_tile, Dh), jnp.float32) for _ in range(num_heads)))
    ms, ls, accs = lax.fori_loop(0, qi + 1, kv_step, init)

    # ---- Deferred softmax normalization (EUP reciprocal); write each head into a
    #      lane-dense (TQ, C) bf16 slab instead of concatenating.  [R4]
    for h in range(num_heads):
        inv_l = pl.reciprocal(ls[h], approx=True)
        ctx_s[:, h * Dh:(h + 1) * Dh] = (accs[h] * inv_l).astype(jnp.bfloat16)

    # ---- Single fused output projection (dp2 identity in eval mode).
    out = jnp.dot(ctx_s[...], wo_ref[...],
                  preferred_element_type=jnp.float32) + bo_ref[...]
    o_ref[...] = out.astype(o_ref.dtype)                                    # [R11] bf16


# --------------------------------------------------------------------------------------
# Wrapper
# --------------------------------------------------------------------------------------
def causal_self_attention(x, w_attn, b_attn, w_proj, b_proj, num_heads,
                          q_tile=None, out_dtype=jnp.bfloat16):
    B, T, C = x.shape
    assert C % num_heads == 0
    if q_tile is None:
        q_tile = min(T, 128)
    assert T % q_tile == 0
    nq = T // q_tile

    # Original module: attn * (1.0 / torch.sqrt(k.size(0))); k.size(0) == B here.
    scale = 1.0 / math.sqrt(B)

    # Split the fused (3C, C) QKV weight like torch .split() of the Linear output and
    # pre-transpose everything to (in, out) so the kernel contracts plain x @ W.  [R3]
    wq_t = jnp.asarray(w_attn[:C].T, jnp.bfloat16)              # (C, C)
    wk_t = jnp.asarray(w_attn[C:2 * C].T, jnp.bfloat16)         # (C, C)
    wv_t = jnp.asarray(w_attn[2 * C:].T, jnp.bfloat16)          # (C, C)
    wo_t = jnp.asarray(w_proj.T, jnp.bfloat16)                  # (C, C)
    bq = b_attn[:C].reshape(1, C).astype(jnp.float32)
    bk = b_attn[C:2 * C].reshape(1, C).astype(jnp.float32)
    bv = b_attn[2 * C:].reshape(1, C).astype(jnp.float32)
    bo = b_proj.reshape(1, C).astype(jnp.float32)
    x_bf = x.astype(jnp.bfloat16)

    kernel = functools.partial(_csa_kernel, num_heads=num_heads, scale=scale,
                               q_tile=q_tile)
    wmap = lambda b, qi: (0, 0)   # constant-index weights: DMA'd only once (not per step)

    return pl.pallas_call(
        kernel,
        out_shape=jax.ShapeDtypeStruct((B, T, C), out_dtype),
        grid_spec=pltpu.PrefetchScalarGridSpec(
            num_scalar_prefetch=0,
            grid=(B, nq),
            in_specs=[
                pl.BlockSpec((None, T, C), lambda b, qi: (b, 0, 0)),  # x (full seq per b)
                pl.BlockSpec((C, C), wmap),      # Wq^T
                pl.BlockSpec((1, C), wmap),      # bq
                pl.BlockSpec((C, C), wmap),      # Wk^T
                pl.BlockSpec((1, C), wmap),      # bk
                pl.BlockSpec((C, C), wmap),      # Wv^T
                pl.BlockSpec((1, C), wmap),      # bv
                pl.BlockSpec((C, C), wmap),      # Wo^T
                pl.BlockSpec((1, C), wmap),      # bo
            ],
            out_specs=pl.BlockSpec((None, q_tile, C), lambda b, qi: (b, qi, 0)),
            scratch_shapes=[
                pltpu.VMEM((T, C), jnp.bfloat16),        # K scratch (per batch element)
                pltpu.VMEM((T, C), jnp.bfloat16),        # V scratch
                pltpu.VMEM((q_tile, C), jnp.bfloat16),   # context slab
            ]),
        compiler_params=pltpu.CompilerParams(
            dimension_semantics=("parallel", "arbitrary"),       # [R1] qi is sequential
            vmem_limit_bytes=32 * 1024 * 1024),                   # [R7]
    )(x_bf, wq_t, bq, wk_t, bk, wv_t, bv, wo_t, bo)


# --------------------------------------------------------------------------------------
# Pure-JAX reference (mirrors the PyTorch forward in eval mode)
# --------------------------------------------------------------------------------------
def reference_forward(x, w_attn, b_attn, w_proj, b_proj, num_heads):
    B, T, C = x.shape
    Dh = C // num_heads
    qkv = x @ w_attn.T + b_attn
    q, k, v = jnp.split(qkv, 3, axis=2)
    q = q.reshape(B, T, num_heads, Dh).transpose(0, 2, 1, 3)
    k = k.reshape(B, T, num_heads, Dh).transpose(0, 2, 1, 3)
    v = v.reshape(B, T, num_heads, Dh).transpose(0, 2, 1, 3)

    att = jnp.einsum("bhqd,bhkd->bhqk", q, k) * (1.0 / math.sqrt(B))  # k.size(0) == B
    mask = np.tril(np.ones((T, T), dtype=bool))
    att = jnp.where(mask, att, -jnp.inf)
    att = jax.nn.softmax(att, axis=-1)
    y = jnp.einsum("bhqk,bhkd->bhqd", att, v)
    y = y.transpose(0, 2, 1, 3).reshape(B, T, C)
    return y @ w_proj.T + b_proj


# --------------------------------------------------------------------------------------
if __name__ == "__main__":
    # Small config consistent with the module: hidden=32, heads=4 (head_dim=8),
    # chunk >= seq_len=8, batch=2.
    B, T, C, H = 2, 8, 32, 4

    key = jax.random.PRNGKey(0)
    k1, k2, k3, k4, k5 = jax.random.split(key, 5)
    x = jax.random.normal(k1, (B, T, C), jnp.float32)
    w_attn = jax.random.normal(k2, (3 * C, C), jnp.float32) * 0.05
    b_attn = jax.random.normal(k3, (3 * C,), jnp.float32) * 0.1
    w_proj = jax.random.normal(k4, (C, C), jnp.float32) * 0.05
    b_proj = jax.random.normal(k5, (C,), jnp.float32) * 0.1

    out = causal_self_attention(x, w_attn, b_attn, w_proj, b_proj, H)
    out = jax.block_until_ready(out)

    ref = reference_forward(x, w_attn, b_attn, w_proj, b_proj, H)
    # bf16 matmul operands + bf16 output + approx reciprocal -> loose tolerance.
    np.testing.assert_allclose(np.asarray(out, dtype=np.float32), np.asarray(ref),
                               rtol=2e-2, atol=2e-2)

    print("KERNEL_OK")
</pallas_src>

<mosaic_0001>
module attributes {stable_mosaic.version = 11 : i64} {
  func.func @_csa_kernel(%arg0: i32, %arg1: i32, %arg2: memref<1x8x32xbf16, #tpu.memory_space<vmem>>, %arg3: memref<32x32xbf16, #tpu.memory_space<vmem>>, %arg4: memref<1x32xf32, #tpu.memory_space<vmem>>, %arg5: memref<32x32xbf16, #tpu.memory_space<vmem>>, %arg6: memref<1x32xf32, #tpu.memory_space<vmem>>, %arg7: memref<32x32xbf16, #tpu.memory_space<vmem>>, %arg8: memref<1x32xf32, #tpu.memory_space<vmem>>, %arg9: memref<32x32xbf16, #tpu.memory_space<vmem>>, %arg10: memref<1x32xf32, #tpu.memory_space<vmem>>, %arg11: memref<1x8x32xbf16, #tpu.memory_space<vmem>>, %arg12: memref<8x32xbf16, #tpu.memory_space<vmem>>, %arg13: memref<8x32xbf16, #tpu.memory_space<vmem>>, %arg14: memref<8x32xbf16, #tpu.memory_space<vmem>>) attributes {dimension_semantics = [#tpu.dimension_semantics<parallel>, #tpu.dimension_semantics<arbitrary>], iteration_bounds = array<i64: 2, 1>, scalar_prefetch = 0 : i64, scratch_operands = 3 : i64, tpu.core_type = #tpu.core_type<tc>, window_params = [{transform_indices = @transform_0, window_bounds = array<i64: 1, 8, 32>}, {pipeline_mode = #tpu.pipeline_mode<synchronous>, transform_indices = @transform_1, window_bounds = array<i64: 32, 32>}, {pipeline_mode = #tpu.pipeline_mode<synchronous>, transform_indices = @transform_2, window_bounds = array<i64: 1, 32>}, {pipeline_mode = #tpu.pipeline_mode<synchronous>, transform_indices = @transform_3, window_bounds = array<i64: 32, 32>}, {pipeline_mode = #tpu.pipeline_mode<synchronous>, transform_indices = @transform_4, window_bounds = array<i64: 1, 32>}, {pipeline_mode = #tpu.pipeline_mode<synchronous>, transform_indices = @transform_5, window_bounds = array<i64: 32, 32>}, {pipeline_mode = #tpu.pipeline_mode<synchronous>, transform_indices = @transform_6, window_bounds = array<i64: 1, 32>}, {pipeline_mode = #tpu.pipeline_mode<synchronous>, transform_indices = @transform_7, window_bounds = array<i64: 32, 32>}, {pipeline_mode = #tpu.pipeline_mode<synchronous>, transform_indices = @transform_8, window_bounds = array<i64: 1, 32>}, {transform_indices = @transform_9, window_bounds = array<i64: 1, 8, 32>}]} {
    %c0_i32 = arith.constant 0 : i32
    %0 = arith.cmpi eq, %arg1, %c0_i32 : i32
    %1 = arith.extui %0 : i1 to i32
    %c0_i32_0 = arith.constant 0 : i32
    %2 = arith.cmpi ne, %1, %c0_i32_0 : i32
    scf.if %2 {
      %c0_37 = arith.constant 0 : index
      %c0_38 = arith.constant 0 : index
      %c0_39 = arith.constant 0 : index
      %66 = vector.load %arg2[%c0_37, %c0_38, %c0_39] : memref<1x8x32xbf16, #tpu.memory_space<vmem>>, vector<1x8x32xbf16>
      %67 = vector.shape_cast %66 : vector<1x8x32xbf16> to vector<8x32xbf16>
      %c0_40 = arith.constant 0 : index
      %c0_41 = arith.constant 0 : index
      %68 = vector.load %arg5[%c0_40, %c0_41] : memref<32x32xbf16, #tpu.memory_space<vmem>>, vector<32x32xbf16>
      %cst_42 = arith.constant dense<0.000000e+00> : vector<8x32xf32>
      %69 = tpu.matmul %67, %68, %cst_42 {dimension_numbers = #tpu.dot_dimension_numbers<[1], [0], [0], [1], [0, 0, 1, 1], [], []>} : vector<8x32xbf16>, vector<32x32xbf16>, vector<8x32xf32> -> vector<8x32xf32>
      %c0_43 = arith.constant 0 : index
      %c0_44 = arith.constant 0 : index
      %70 = vector.load %arg6[%c0_43, %c0_44] : memref<1x32xf32, #tpu.memory_space<vmem>>, vector<1x32xf32>
      %71 = vector.broadcast %70 : vector<1x32xf32> to vector<8x32xf32>
      %72 = arith.addf %69, %71 : vector<8x32xf32>
      %c0_45 = arith.constant 0 : index
      %c0_46 = arith.constant 0 : index
      %73 = vector.load %arg7[%c0_45, %c0_46] : memref<32x32xbf16, #tpu.memory_space<vmem>>, vector<32x32xbf16>
      %cst_47 = arith.constant dense<0.000000e+00> : vector<8x32xf32>
      %74 = tpu.matmul %67, %73, %cst_47 {dimension_numbers = #tpu.dot_dimension_numbers<[1], [0], [0], [1], [0, 0, 1, 1], [], []>} : vector<8x32xbf16>, vector<32x32xbf16>, vector<8x32xf32> -> vector<8x32xf32>
      %c0_48 = arith.constant 0 : index
      %c0_49 = arith.constant 0 : index
      %75 = vector.load %arg8[%c0_48, %c0_49] : memref<1x32xf32, #tpu.memory_space<vmem>>, vector<1x32xf32>
      %76 = vector.broadcast %75 : vector<1x32xf32> to vector<8x32xf32>
      %77 = arith.addf %74, %76 : vector<8x32xf32>
      %78 = arith.truncf %72 : vector<8x32xf32> to vector<8x32xbf16>
      %c0_50 = arith.constant 0 : index
      %c0_51 = arith.constant 0 : index
      %79 = vector.load %arg12[%c0_50, %c0_51] : memref<8x32xbf16, #tpu.memory_space<vmem>>, vector<8x32xbf16>
      tpu.vector_store %arg12[%c0_50, %c0_51], %78 {strides = array<i32>} : memref<8x32xbf16, #tpu.memory_space<vmem>>, vector<8x32xbf16>,
      %80 = arith.truncf %77 : vector<8x32xf32> to vector<8x32xbf16>
      %c0_52 = arith.constant 0 : index
      %c0_53 = arith.constant 0 : index
      %81 = vector.load %arg13[%c0_52, %c0_53] : memref<8x32xbf16, #tpu.memory_space<vmem>>, vector<8x32xbf16>
      tpu.vector_store %arg13[%c0_52, %c0_53], %80 {strides = array<i32>} : memref<8x32xbf16, #tpu.memory_space<vmem>>, vector<8x32xbf16>,
    } else {
    }
    %c8_i32 = arith.constant 8 : i32
    %3 = arith.muli %arg1, %c8_i32 : i32
    %4 = tpu.assume_multiple %3, 8 : i32
    %c0 = arith.constant 0 : index
    %5 = arith.index_cast %4 : i32 to index
    %c0_1 = arith.constant 0 : index
    %6 = vector.load %arg2[%c0, %5, %c0_1] : memref<1x8x32xbf16, #tpu.memory_space<vmem>>, vector<1x8x32xbf16>
    %7 = vector.shape_cast %6 : vector<1x8x32xbf16> to vector<8x32xbf16>
    %c0_2 = arith.constant 0 : index
    %c0_3 = arith.constant 0 : index
    %8 = vector.load %arg3[%c0_2, %c0_3] : memref<32x32xbf16, #tpu.memory_space<vmem>>, vector<32x32xbf16>
    %cst = arith.constant dense<0.000000e+00> : vector<8x32xf32>
    %9 = tpu.matmul %7, %8, %cst {dimension_numbers = #tpu.dot_dimension_numbers<[1], [0], [0], [1], [0, 0, 1, 1], [], []>} : vector<8x32xbf16>, vector<32x32xbf16>, vector<8x32xf32> -> vector<8x32xf32>
    %c0_4 = arith.constant 0 : index
    %c0_5 = arith.constant 0 : index
    %10 = vector.load %arg4[%c0_4, %c0_5] : memref<1x32xf32, #tpu.memory_space<vmem>>, vector<1x32xf32>
    %11 = vector.broadcast %10 : vector<1x32xf32> to vector<8x32xf32>
    %12 = arith.addf %9, %11 : vector<8x32xf32>
    %cst_6 = arith.constant 0.707106769 : f32
    %13 = vector.broadcast %cst_6 : f32 to vector<8x32xf32>
    %14 = arith.mulf %12, %13 : vector<8x32xf32>
    %15 = arith.truncf %14 : vector<8x32xf32> to vector<8x32xbf16>
    %16 = tpu.iota {dimensions = array<i32: 0>} : vector<8x8xi32>
    %17 = vector.broadcast %4 : i32 to vector<8x8xi32>
    %18 = arith.addi %16, %17 : vector<8x8xi32>
    %19 = tpu.iota {dimensions = array<i32: 1>} : vector<8x8xi32>
    %cst_7 = arith.constant -1.000000e+30 : f32
    %20 = vector.broadcast %cst_7 : f32 to vector<8x1xf32>
    %cst_8 = arith.constant -1.000000e+30 : f32
    %21 = vector.broadcast %cst_8 : f32 to vector<8x1xf32>
    %cst_9 = arith.constant -1.000000e+30 : f32
    %22 = vector.broadcast %cst_9 : f32 to vector<8x1xf32>
    %cst_10 = arith.constant -1.000000e+30 : f32
    %23 = vector.broadcast %cst_10 : f32 to vector<8x1xf32>
    %cst_11 = arith.constant 0.000000e+00 : f32
    %24 = vector.broadcast %cst_11 : f32 to vector<8x1xf32>
    %cst_12 = arith.constant 0.000000e+00 : f32
    %25 = vector.broadcast %cst_12 : f32 to vector<8x1xf32>
    %cst_13 = arith.constant 0.000000e+00 : f32
    %26 = vector.broadcast %cst_13 : f32 to vector<8x1xf32>
    %cst_14 = arith.constant 0.000000e+00 : f32
    %27 = vector.broadcast %cst_14 : f32 to vector<8x1xf32>
    %cst_15 = arith.constant 0.000000e+00 : f32
    %28 = vector.broadcast %cst_15 : f32 to vector<8x8xf32>
    %cst_16 = arith.constant 0.000000e+00 : f32
    %29 = vector.broadcast %cst_16 : f32 to vector<8x8xf32>
    %cst_17 = arith.constant 0.000000e+00 : f32
    %30 = vector.broadcast %cst_17 : f32 to vector<8x8xf32>
    %cst_18 = arith.constant 0.000000e+00 : f32
    %31 = vector.broadcast %cst_18 : f32 to vector<8x8xf32>
    %c1_i32 = arith.constant 1 : i32
    %32 = arith.addi %arg1, %c1_i32 : i32
    %cst_19 = arith.constant -1.000000e+30 : f32
    %c0_i32_20 = arith.constant 0 : i32
    %33 = arith.subi %32, %c0_i32_20 : i32
    %34 = arith.addi %c0_i32_20, %33 : i32
    %c1_i32_21 = arith.constant 1 : i32
    %35:12 = scf.for %arg15 = %c0_i32_20 to %34 step %c1_i32_21 iter_args(%arg16 = %20, %arg17 = %21, %arg18 = %22, %arg19 = %23, %arg20 = %24, %arg21 = %25, %arg22 = %26, %arg23 = %27, %arg24 = %28, %arg25 = %29, %arg26 = %30, %arg27 = %31) -> (vector<8x1xf32>, vector<8x1xf32>, vector<8x1xf32>, vector<8x1xf32>, vector<8x1xf32>, vector<8x1xf32>, vector<8x1xf32>, vector<8x1xf32>, vector<8x8xf32>, vector<8x8xf32>, vector<8x8xf32>, vector<8x8xf32>)  : i32 {
      %c8_i32_37 = arith.constant 8 : i32
      %66 = arith.muli %arg15, %c8_i32_37 : i32
      %67 = tpu.assume_multiple %66, 8 : i32
      %68 = arith.index_cast %67 : i32 to index
      %c0_38 = arith.constant 0 : index
      %69 = vector.load %arg12[%68, %c0_38] : memref<8x32xbf16, #tpu.memory_space<vmem>>, vector<8x32xbf16>
      %70 = arith.index_cast %67 : i32 to index
      %c0_39 = arith.constant 0 : index
      %71 = vector.load %arg13[%70, %c0_39] : memref<8x32xbf16, #tpu.memory_space<vmem>>, vector<8x32xbf16>
      %72 = vector.broadcast %67 : i32 to vector<8x8xi32>
      %73 = arith.addi %19, %72 : vector<8x8xi32>
      %74 = arith.cmpi sge, %18, %73 : vector<8x8xi32>
      %75 = vector.extract_strided_slice %15 {offsets = [0, 0], sizes = [8, 8], strides = [1, 1]} : vector<8x32xbf16> to vector<8x8xbf16>
      %76 = vector.extract_strided_slice %69 {offsets = [0, 0], sizes = [8, 8], strides = [1, 1]} : vector<8x32xbf16> to vector<8x8xbf16>
      %cst_40 = arith.constant dense<0.000000e+00> : vector<8x8xf32>
      %77 = tpu.matmul %75, %76, %cst_40 {dimension_numbers = #tpu.dot_dimension_numbers<[1], [1], [0], [0], [0, 0, 1, 0], [], []>} : vector<8x8xbf16>, vector<8x8xbf16>, vector<8x8xf32> -> vector<8x8xf32>
      %78 = vector.broadcast %cst_19 : f32 to vector<8x8xf32>
      %79 = arith.select %74, %77, %78 : vector<8x8xi1>, vector<8x8xf32>
      %cst_41 = arith.constant dense<0xFF800000> : vector<8xf32>
      %80 = vector.multi_reduction <maximumf>, %79, %cst_41 [1] : vector<8x8xf32> to vector<8xf32>
      %81 = vector.shape_cast %80 : vector<8xf32> to vector<8x1xf32>
      %82 = arith.maximumf %arg16, %81 : vector<8x1xf32>
      %83 = arith.subf %arg16, %82 : vector<8x1xf32>
      %84 = math.exp %83 : vector<8x1xf32>
      %85 = vector.broadcast %82 : vector<8x1xf32> to vector<8x8xf32>
      %86 = arith.subf %79, %85 : vector<8x8xf32>
      %87 = math.exp %86 : vector<8x8xf32>
      %88 = arith.mulf %84, %arg20 : vector<8x1xf32>
      %cst_42 = arith.constant dense<0.000000e+00> : vector<8xf32>
      %89 = vector.multi_reduction <add>, %87, %cst_42 [1] : vector<8x8xf32> to vector<8xf32>
      %90 = vector.shape_cast %89 : vector<8xf32> to vector<8x1xf32>
      %91 = arith.addf %88, %90 : vector<8x1xf32>
      %92 = vector.broadcast %84 : vector<8x1xf32> to vector<8x8xf32>
      %93 = arith.mulf %92, %arg24 : vector<8x8xf32>
      %94 = arith.truncf %87 : vector<8x8xf32> to vector<8x8xbf16>
      %95 = vector.extract_strided_slice %71 {offsets = [0, 0], sizes = [8, 8], strides = [1, 1]} : vector<8x32xbf16> to vector<8x8xbf16>
      %cst_43 = arith.constant dense<0.000000e+00> : vector<8x8xf32>
      %96 = tpu.matmul %94, %95, %cst_43 {dimension_numbers = #tpu.dot_dimension_numbers<[1], [0], [0], [1], [0, 0, 1, 1], [], []>} : vector<8x8xbf16>, vector<8x8xbf16>, vector<8x8xf32> -> vector<8x8xf32>
      %97 = arith.addf %93, %96 : vector<8x8xf32>
      %98 = vector.extract_strided_slice %15 {offsets = [0, 8], sizes = [8, 8], strides = [1, 1]} : vector<8x32xbf16> to vector<8x8xbf16>
      %99 = vector.extract_strided_slice %69 {offsets = [0, 8], sizes = [8, 8], strides = [1, 1]} : vector<8x32xbf16> to vector<8x8xbf16>
      %cst_44 = arith.constant dense<0.000000e+00> : vector<8x8xf32>
      %100 = tpu.matmul %98, %99, %cst_44 {dimension_numbers = #tpu.dot_dimension_numbers<[1], [1], [0], [0], [0, 0, 1, 0], [], []>} : vector<8x8xbf16>, vector<8x8xbf16>, vector<8x8xf32> -> vector<8x8xf32>
      %101 = vector.broadcast %cst_19 : f32 to vector<8x8xf32>
      %102 = arith.select %74, %100, %101 : vector<8x8xi1>, vector<8x8xf32>
      %cst_45 = arith.constant dense<0xFF800000> : vector<8xf32>
      %103 = vector.multi_reduction <maximumf>, %102, %cst_45 [1] : vector<8x8xf32> to vector<8xf32>
      %104 = vector.shape_cast %103 : vector<8xf32> to vector<8x1xf32>
      %105 = arith.maximumf %arg17, %104 : vector<8x1xf32>
      %106 = arith.subf %arg17, %105 : vector<8x1xf32>
      %107 = math.exp %106 : vector<8x1xf32>
      %108 = vector.broadcast %105 : vector<8x1xf32> to vector<8x8xf32>
      %109 = arith.subf %102, %108 : vector<8x8xf32>
      %110 = math.exp %109 : vector<8x8xf32>
      %111 = arith.mulf %107, %arg21 : vector<8x1xf32>
      %cst_46 = arith.constant dense<0.000000e+00> : vector<8xf32>
      %112 = vector.multi_reduction <add>, %110, %cst_46 [1] : vector<8x8xf32> to vector<8xf32>
      %113 = vector.shape_cast %112 : vector<8xf32> to vector<8x1xf32>
      %114 = arith.addf %111, %113 : vector<8x1xf32>
      %115 = vector.broadcast %107 : vector<8x1xf32> to vector<8x8xf32>
      %116 = arith.mulf %115, %arg25 : vector<8x8xf32>
      %117 = arith.truncf %110 : vector<8x8xf32> to vector<8x8xbf16>
      %118 = vector.extract_strided_slice %71 {offsets = [0, 8], sizes = [8, 8], strides = [1, 1]} : vector<8x32xbf16> to vector<8x8xbf16>
      %cst_47 = arith.constant dense<0.000000e+00> : vector<8x8xf32>
      %119 = tpu.matmul %117, %118, %cst_47 {dimension_numbers = #tpu.dot_dimension_numbers<[1], [0], [0], [1], [0, 0, 1, 1], [], []>} : vector<8x8xbf16>, vector<8x8xbf16>, vector<8x8xf32> -> vector<8x8xf32>
      %120 = arith.addf %116, %119 : vector<8x8xf32>
      %121 = vector.extract_strided_slice %15 {offsets = [0, 16], sizes = [8, 8], strides = [1, 1]} : vector<8x32xbf16> to vector<8x8xbf16>
      %122 = vector.extract_strided_slice %69 {offsets = [0, 16], sizes = [8, 8], strides = [1, 1]} : vector<8x32xbf16> to vector<8x8xbf16>
      %cst_48 = arith.constant dense<0.000000e+00> : vector<8x8xf32>
      %123 = tpu.matmul %121, %122, %cst_48 {dimension_numbers = #tpu.dot_dimension_numbers<[1], [1], [0], [0], [0, 0, 1, 0], [], []>} : vector<8x8xbf16>, vector<8x8xbf16>, vector<8x8xf32> -> vector<8x8xf32>
      %124 = vector.broadcast %cst_19 : f32 to vector<8x8xf32>
      %125 = arith.select %74, %123, %124 : vector<8x8xi1>, vector<8x8xf32>
      %cst_49 = arith.constant dense<0xFF800000> : vector<8xf32>
      %126 = vector.multi_reduction <maximumf>, %125, %cst_49 [1] : vector<8x8xf32> to vector<8xf32>
      %127 = vector.shape_cast %126 : vector<8xf32> to vector<8x1xf32>
      %128 = arith.maximumf %arg18, %127 : vector<8x1xf32>
      %129 = arith.subf %arg18, %128 : vector<8x1xf32>
      %130 = math.exp %129 : vector<8x1xf32>
      %131 = vector.broadcast %128 : vector<8x1xf32> to vector<8x8xf32>
      %132 = arith.subf %125, %131 : vector<8x8xf32>
      %133 = math.exp %132 : vector<8x8xf32>
      %134 = arith.mulf %130, %arg22 : vector<8x1xf32>
      %cst_50 = arith.constant dense<0.000000e+00> : vector<8xf32>
      %135 = vector.multi_reduction <add>, %133, %cst_50 [1] : vector<8x8xf32> to vector<8xf32>
      %136 = vector.shape_cast %135 : vector<8xf32> to vector<8x1xf32>
      %137 = arith.addf %134, %136 : vector<8x1xf32>
      %138 = vector.broadcast %130 : vector<8x1xf32> to vector<8x8xf32>
      %139 = arith.mulf %138, %arg26 : vector<8x8xf32>
      %140 = arith.truncf %133 : vector<8x8xf32> to vector<8x8xbf16>
      %141 = vector.extract_strided_slice %71 {offsets = [0, 16], sizes = [8, 8], strides = [1, 1]} : vector<8x32xbf16> to vector<8x8xbf16>
      %cst_51 = arith.constant dense<0.000000e+00> : vector<8x8xf32>
      %142 = tpu.matmul %140, %141, %cst_51 {dimension_numbers = #tpu.dot_dimension_numbers<[1], [0], [0], [1], [0, 0, 1, 1], [], []>} : vector<8x8xbf16>, vector<8x8xbf16>, vector<8x8xf32> -> vector<8x8xf32>
      %143 = arith.addf %139, %142 : vector<8x8xf32>
      %144 = vector.extract_strided_slice %15 {offsets = [0, 24], sizes = [8, 8], strides = [1, 1]} : vector<8x32xbf16> to vector<8x8xbf16>
      %145 = vector.extract_strided_slice %69 {offsets = [0, 24], sizes = [8, 8], strides = [1, 1]} : vector<8x32xbf16> to vector<8x8xbf16>
      %cst_52 = arith.constant dense<0.000000e+00> : vector<8x8xf32>
      %146 = tpu.matmul %144, %145, %cst_52 {dimension_numbers = #tpu.dot_dimension_numbers<[1], [1], [0], [0], [0, 0, 1, 0], [], []>} : vector<8x8xbf16>, vector<8x8xbf16>, vector<8x8xf32> -> vector<8x8xf32>
      %147 = vector.broadcast %cst_19 : f32 to vector<8x8xf32>
      %148 = arith.select %74, %146, %147 : vector<8x8xi1>, vector<8x8xf32>
      %cst_53 = arith.constant dense<0xFF800000> : vector<8xf32>
      %149 = vector.multi_reduction <maximumf>, %148, %cst_53 [1] : vector<8x8xf32> to vector<8xf32>
      %150 = vector.shape_cast %149 : vector<8xf32> to vector<8x1xf32>
      %151 = arith.maximumf %arg19, %150 : vector<8x1xf32>
      %152 = arith.subf %arg19, %151 : vector<8x1xf32>
      %153 = math.exp %152 : vector<8x1xf32>
      %154 = vector.broadcast %151 : vector<8x1xf32> to vector<8x8xf32>
      %155 = arith.subf %148, %154 : vector<8x8xf32>
      %156 = math.exp %155 : vector<8x8xf32>
      %157 = arith.mulf %153, %arg23 : vector<8x1xf32>
      %cst_54 = arith.constant dense<0.000000e+00> : vector<8xf32>
      %158 = vector.multi_reduction <add>, %156, %cst_54 [1] : vector<8x8xf32> to vector<8xf32>
      %159 = vector.shape_cast %158 : vector<8xf32> to vector<8x1xf32>
      %160 = arith.addf %157, %159 : vector<8x1xf32>
      %161 = vector.broadcast %153 : vector<8x1xf32> to vector<8x8xf32>
      %162 = arith.mulf %161, %arg27 : vector<8x8xf32>
      %163 = arith.truncf %156 : vector<8x8xf32> to vector<8x8xbf16>
      %164 = vector.extract_strided_slice %71 {offsets = [0, 24], sizes = [8, 8], strides = [1, 1]} : vector<8x32xbf16> to vector<8x8xbf16>
      %cst_55 = arith.constant dense<0.000000e+00> : vector<8x8xf32>
      %165 = tpu.matmul %163, %164, %cst_55 {dimension_numbers = #tpu.dot_dimension_numbers<[1], [0], [0], [1], [0, 0, 1, 1], [], []>} : vector<8x8xbf16>, vector<8x8xbf16>, vector<8x8xf32> -> vector<8x8xf32>
      %166 = arith.addf %162, %165 : vector<8x8xf32>
      scf.yield %82, %105, %128, %151, %91, %114, %137, %160, %97, %120, %143, %166 : vector<8x1xf32>, vector<8x1xf32>, vector<8x1xf32>, vector<8x1xf32>, vector<8x1xf32>, vector<8x1xf32>, vector<8x1xf32>, vector<8x1xf32>, vector<8x8xf32>, vector<8x8xf32>, vector<8x8xf32>, vector<8x8xf32>
    }
    %36 = tpu.reciprocal %35#4 {approx = true} : vector<8x1xf32> -> vector<8x1xf32>
    %37 = vector.broadcast %36 : vector<8x1xf32> to vector<8x8xf32>
    %38 = arith.mulf %35#8, %37 : vector<8x8xf32>
    %39 = arith.truncf %38 : vector<8x8xf32> to vector<8x8xbf16>
    %c0_22 = arith.constant 0 : index
    %c0_23 = arith.constant 0 : index
    %40 = vector.load %arg14[%c0_22, %c0_23] : memref<8x32xbf16, #tpu.memory_space<vmem>>, vector<8x8xbf16>
    tpu.vector_store %arg14[%c0_22, %c0_23], %39 {strides = array<i32>} : memref<8x32xbf16, #tpu.memory_space<vmem>>, vector<8x8xbf16>,
    %41 = tpu.reciprocal %35#5 {approx = true} : vector<8x1xf32> -> vector<8x1xf32>
    %42 = vector.broadcast %41 : vector<8x1xf32> to vector<8x8xf32>
    %43 = arith.mulf %35#9, %42 : vector<8x8xf32>
    %44 = arith.truncf %43 : vector<8x8xf32> to vector<8x8xbf16>
    %c0_24 = arith.constant 0 : index
    %c8 = arith.constant 8 : index
    %45 = vector.load %arg14[%c0_24, %c8] : memref<8x32xbf16, #tpu.memory_space<vmem>>, vector<8x8xbf16>
    tpu.vector_store %arg14[%c0_24, %c8], %44 {strides = array<i32>} : memref<8x32xbf16, #tpu.memory_space<vmem>>, vector<8x8xbf16>,
    %46 = tpu.reciprocal %35#6 {approx = true} : vector<8x1xf32> -> vector<8x1xf32>
    %47 = vector.broadcast %46 : vector<8x1xf32> to vector<8x8xf32>
    %48 = arith.mulf %35#10, %47 : vector<8x8xf32>
    %49 = arith.truncf %48 : vector<8x8xf32> to vector<8x8xbf16>
    %c0_25 = arith.constant 0 : index
    %c16 = arith.constant 16 : index
    %50 = vector.load %arg14[%c0_25, %c16] : memref<8x32xbf16, #tpu.memory_space<vmem>>, vector<8x8xbf16>
    tpu.vector_store %arg14[%c0_25, %c16], %49 {strides = array<i32>} : memref<8x32xbf16, #tpu.memory_space<vmem>>, vector<8x8xbf16>,
    %51 = tpu.reciprocal %35#7 {approx = true} : vector<8x1xf32> -> vector<8x1xf32>
    %52 = vector.broadcast %51 : vector<8x1xf32> to vector<8x8xf32>
    %53 = arith.mulf %35#11, %52 : vector<8x8xf32>
    %54 = arith.truncf %53 : vector<8x8xf32> to vector<8x8xbf16>
    %c0_26 = arith.constant 0 : index
    %c24 = arith.constant 24 : index
    %55 = vector.load %arg14[%c0_26, %c24] : memref<8x32xbf16, #tpu.memory_space<vmem>>, vector<8x8xbf16>
    tpu.vector_store %arg14[%c0_26, %c24], %54 {strides = array<i32>} : memref<8x32xbf16, #tpu.memory_space<vmem>>, vector<8x8xbf16>,
    %c0_27 = arith.constant 0 : index
    %c0_28 = arith.constant 0 : index
    %56 = vector.load %arg14[%c0_27, %c0_28] : memref<8x32xbf16, #tpu.memory_space<vmem>>, vector<8x32xbf16>
    %c0_29 = arith.constant 0 : index
    %c0_30 = arith.constant 0 : index
    %57 = vector.load %arg9[%c0_29, %c0_30] : memref<32x32xbf16, #tpu.memory_space<vmem>>, vector<32x32xbf16>
    %cst_31 = arith.constant dense<0.000000e+00> : vector<8x32xf32>
    %58 = tpu.matmul %56, %57, %cst_31 {dimension_numbers = #tpu.dot_dimension_numbers<[1], [0], [0], [1], [0, 0, 1, 1], [], []>} : vector<8x32xbf16>, vector<32x32xbf16>, vector<8x32xf32> -> vector<8x32xf32>
    %c0_32 = arith.constant 0 : index
    %c0_33 = arith.constant 0 : index
    %59 = vector.load %arg10[%c0_32, %c0_33] : memref<1x32xf32, #tpu.memory_space<vmem>>, vector<1x32xf32>
    %60 = vector.broadcast %59 : vector<1x32xf32> to vector<8x32xf32>
    %61 = arith.addf %58, %60 : vector<8x32xf32>
    %62 = arith.truncf %61 : vector<8x32xf32> to vector<8x32xbf16>
    %c0_34 = arith.constant 0 : index
    %c0_35 = arith.constant 0 : index
    %c0_36 = arith.constant 0 : index
    %63 = vector.load %arg11[%c0_34, %c0_35, %c0_36] : memref<1x8x32xbf16, #tpu.memory_space<vmem>>, vector<1x8x32xbf16>
    %64 = vector.shape_cast %63 : vector<1x8x32xbf16> to vector<8x32xbf16>
    %65 = vector.shape_cast %62 : vector<8x32xbf16> to vector<1x8x32xbf16>
    tpu.vector_store %arg11[%c0_34, %c0_35, %c0_36], %65 {strides = array<i32>} : memref<1x8x32xbf16, #tpu.memory_space<vmem>>, vector<1x8x32xbf16>,
    return
  }
  func.func @transform_0(%arg0: i32, %arg1: i32) -> (i32, i32, i32) {
    %c0_i32 = arith.constant 0 : i32
    %c0_i32_0 = arith.constant 0 : i32
    %c0_i32_1 = arith.constant 0 : i32
    return %arg0, %c0_i32, %c0_i32_0 : i32, i32, i32
  }
  func.func @transform_1(%arg0: i32, %arg1: i32) -> (i32, i32) {
    %c0_i32 = arith.constant 0 : i32
    %c0_i32_0 = arith.constant 0 : i32
    %c0_i32_1 = arith.constant 0 : i32
    return %c0_i32, %c0_i32_0 : i32, i32
  }
  func.func @transform_2(%arg0: i32, %arg1: i32) -> (i32, i32) {
    %c0_i32 = arith.constant 0 : i32
    %c0_i32_0 = arith.constant 0 : i32
    %c0_i32_1 = arith.constant 0 : i32
    return %c0_i32, %c0_i32_0 : i32, i32
  }
  func.func @transform_3(%arg0: i32, %arg1: i32) -> (i32, i32) {
    %c0_i32 = arith.constant 0 : i32
    %c0_i32_0 = arith.constant 0 : i32
    %c0_i32_1 = arith.constant 0 : i32
    return %c0_i32, %c0_i32_0 : i32, i32
  }
  func.func @transform_4(%arg0: i32, %arg1: i32) -> (i32, i32) {
    %c0_i32 = arith.constant 0 : i32
    %c0_i32_0 = arith.constant 0 : i32
    %c0_i32_1 = arith.constant 0 : i32
    return %c0_i32, %c0_i32_0 : i32, i32
  }
  func.func @transform_5(%arg0: i32, %arg1: i32) -> (i32, i32) {
    %c0_i32 = arith.constant 0 : i32
    %c0_i32_0 = arith.constant 0 : i32
    %c0_i32_1 = arith.constant 0 : i32
    return %c0_i32, %c0_i32_0 : i32, i32
  }
  func.func @transform_6(%arg0: i32, %arg1: i32) -> (i32, i32) {
    %c0_i32 = arith.constant 0 : i32
    %c0_i32_0 = arith.constant 0 : i32
    %c0_i32_1 = arith.constant 0 : i32
    return %c0_i32, %c0_i32_0 : i32, i32
  }
  func.func @transform_7(%arg0: i32, %arg1: i32) -> (i32, i32) {
    %c0_i32 = arith.constant 0 : i32
    %c0_i32_0 = arith.constant 0 : i32
    %c0_i32_1 = arith.constant 0 : i32
    return %c0_i32, %c0_i32_0 : i32, i32
  }
  func.func @transform_8(%arg0: i32, %arg1: i32) -> (i32, i32) {
    %c0_i32 = arith.constant 0 : i32
    %c0_i32_0 = arith.constant 0 : i32
    %c0_i32_1 = arith.constant 0 : i32
    return %c0_i32, %c0_i32_0 : i32, i32
  }
  func.func @transform_9(%arg0: i32, %arg1: i32) -> (i32, i32, i32) {
    %c0_i32 = arith.constant 0 : i32
    %c0_i32_0 = arith.constant 0 : i32
    return %arg0, %arg1, %c0_i32 : i32, i32, i32
  }
}

</mosaic_0001>

<bundles_post_ra>
// kernel: tpu_custom_call.1
= control target key start
LH: loop header
LB: loop body
LE: loop exit
PB: predicated region body
PF: predicated region fallthrough
CT: control target
= control target key end

     0   :  { %s2756_s0 = inlined_call_operand.hbm [shape: bf16[2,8,32], index: 0, kind: input, shape index: {}]   ;;  %s2757_s1 = inlined_call_operand.hbm [shape: bf16[32,32], index: 1, kind: input, shape index: {}]   ;;  %s2758_s2 = inlined_call_operand.vmem [shape: f32[1,32], index: 2, kind: input, shape index: {}]   ;;  %s2759_s3 = inlined_call_operand.hbm [shape: bf16[32,32], index: 3, kind: input, shape index: {}]   ;;  %s2760_s4 = inlined_call_operand.vmem [shape: f32[1,32], index: 4, kind: input, shape index: {}]   ;;  %s2761_s5 = inlined_call_operand.vmem [shape: bf16[32,32], index: 5, kind: input, shape index: {}]   ;;  %s2762_s6 = inlined_call_operand.vmem [shape: f32[1,32], index: 6, kind: input, shape index: {}]   ;;  %s2763_s7 = inlined_call_operand.hbm [shape: bf16[32,32], index: 7, kind: input, shape index: {}]   ;;  %s2764_s8 = inlined_call_operand.vmem [shape: f32[1,32], index: 8, kind: input, shape index: {}]   ;;  %s2765_s9 = inlined_call_operand.hbm [shape: bf16[2,8,32], index: 9, kind: output, shape index: {}]  }
   0x1   :  { %2773 = sst [smem:[#allocation21_spill]] %s2758_s2 }
   0x2   :  { %2774 = sst [smem:[#allocation22_spill]] %s2764_s8 }
   0x3   :  { %2775 = sst [smem:[#allocation23_spill]] %s2765_s9 }
   0x4   :  { %14 = vsyncpa [#allocation6], 0 }
   0x5   :  { %16 = vsyncpa [#allocation6 + $0x1], 0 }
   0x6   :  { %17 = vsyncpa [#allocation9], 0 }
   0x7   :  { %18 = vsyncpa [#allocation12], 0 }
   0x8   :  { %19 = vsyncpa [#allocation7], 0 }
   0x9   :  { %21 = vsyncpa [#allocation7 + $0x1], 0  ;;  %s2190_s30 = smov 0   ;;  %s2192_s10 = smov 0  }
   0xa   :  { %s2194_s11 = smov 0   ;;  %s2196_s12 = smov 0  }
   0xb   :  { %s2198_s13 = smov 0   ;;  %s2200_s14 = smov 0  }
   0xc LB: > { %2776 = sst [smem:[#allocation18_spill]] %s2049_s30  ;;  %s1408_s15 = sadd.s32 4294967295, %s2069_s14   ;;  %s2069_s14 = sphi %s2200_s14, %s27_s14   ;;  %s2065_s13 = sphi %s2198_s13, %s2818_s13   ;;  %s2061_s12 = sphi %s2196_s12, %s2817_s12   ;;  %s2057_s11 = sphi %s2194_s11, %s2816_s11   ;;  %s2053_s10 = sphi %s2192_s10, %s2815_s10   ;;  %s2049_s30 = sphi %s2190_s30, %s2814_s30  }
   0xd   : > { %2777 = sst [smem:[#allocation19_spill]] %s2061_s12  ;;  %s1409_s16 = sadd.s32 4294967294, %s2069_s14  }
   0xe   : > { %p59_p0 = scmp.ne.s32.totalorder %s2053_s10, %s2049_s30  ;;  %p2224_p1 = scmp.eq.s32.totalorder %s1408_s15, 0 }
   0xf   : > { %p2228_p2 = scmp.eq.s32.totalorder %s1408_s15, 1  ;;  %p259_p3 = scmp.eq.s32.totalorder %s1409_s16, 1 }
  0x10   : > { %s2778_s17 = scalar_select %p2224_p1, 1, 0 }
  0x11   : > { %s2779_s18 = scalar_select %p2228_p2, 1, 0 }
  0x12   : > { %p2234_p4 = por %p2224_p1, %p59_p0  ;;  %p1410_p5 = scmp.ge.s32.totalorder %s2069_s14, 1 }
  0x13   : > { %p2239_p6 = por %p259_p3, %p59_p0  ;;  %p266_p7 = scmp.lt.s32.totalorder %s2069_s14, 3 }
  0x14   : > { %s2780_s19 = scalar_select %p2234_p4, 1, 0 }
  0x15   : > { %s2781_s20 = scalar_select %p2239_p6, 1, 0 }
  0x16   : > { %p2244_p8 = pnand %p1410_p5, %p266_p7  ;;  %s2123_s22 = smov [#allocation8]  }
  0x17   : > { %2782 = sst [smem:[#allocation20_spill]] %s2781_s20  ;;  %s278_s23 = sshll.u32 %s2123_s22, 4  ;;  %s2248_s23 = int_to_ptr.vmem [resolvable:$true] %s278_s23 }
  0x18   : > { %s2783_s21 = scalar_select %p2244_p8, 1, 0 }
  0x19   : > { %p1586_p9 = pneg %p2244_p8  ;;  %s2124_s25 = smov [#allocation10]  }
  0x1a   : > { %s294_s26 = sshll.u32 %s2124_s25, 4  ;;  %s2125_s27 = smov [#allocation11]   ;;  %s2259_s26 = int_to_ptr.vmem [resolvable:$true] %s294_s26 }
  0x1b   : > { %p2255_p11 = pnand %p1586_p9, %p2224_p1  ;;  %s2261_s28 = sshll.u32 %s2125_s27, 4  ;;  %s317_s28 = int_to_ptr.vmem [resolvable:$true] %s2261_s28 }
  0x1c   : > { %s1813_s16 = scalar_lea.hbm %s2757_s1, 256 }
  0x1d   : > { %p1814_p12 = scmp.ne.s32.totalorder %s2757_s1, %s1813_s16  ;;  %p2271_p13 = pneg %p2255_p11 }
  0x1e   : > { %p1820_p5 = scmp.lt.u32.totalorder %s1813_s16, %s2757_s1 }
  0x1f   : > { %p1816_p0 = pnand %p2271_p13, %p1814_p12 }
  0x21   : > { %p1817_p3 = pneg %p1816_p0 }
  0x23   : > { %p1822_p7 = pnand %p1820_p5, %p1817_p3 }
  0x25   : > { %1825 = shalt.err (!%p1822_p7)
}
  0x26   : > { %s1826_s20 = scalar_lea.vmem %s2248_s23, 256  ;;  %p1834_p1 = scmp.lt.s32.totalorder %s2248_s23, %s2248_s23 }
  0x27   : > { %p1827_p9 = scmp.ne.s32.totalorder %s2248_s23, %s1826_s20  ;;  %p1835_p4 = scmp.lt.s32.totalorder %s1826_s20, %s1826_s20 }
  0x29   : > { %p1829_p10 = pnand %p1827_p9, %p2271_p13  ;;  %p1836_p12 = por %p1835_p4, %p1834_p1 }
  0x2b   : > { %p1830_p6 = pneg %p1829_p10 }
  0x2d   : > { %p1837_p0 = pnand %p1836_p12, %p1830_p6 }
  0x2f   : > { %1840 = shalt.err (!%p1837_p0)
}
  0x30   : > { %s2126_s29 = smov 64   ;;  %s2127_s15 = smov 4  }
  0x31   : > { %1589 = dma.hbm_to_vmem [thread:$0]  (!%p2255_p11), %s2757_s1, 256, %s2248_s23, [#allocation9], %s2126_s29, %s2126_s29, %s2127_s15  }
  0x32   : > { %s1841_s20 = scalar_lea.hbm %s2759_s3, 256 }
  0x33   : > { %p1842_p1 = scmp.ne.s32.totalorder %s2759_s3, %s1841_s20  ;;  %p1848_p10 = scmp.lt.u32.totalorder %s1841_s20, %s2759_s3 }
  0x35   : > { %p1844_p4 = pnand %p1842_p1, %p2271_p13 }
  0x37   : > { %p1845_p6 = pneg %p1844_p4 }
  0x39   : > { %p1850_p3 = pnand %p1848_p10, %p1845_p6 }
  0x3b   : > { %1853 = shalt.err (!%p1850_p3)
}
  0x3c   : > { %s1854_s23 = scalar_lea.vmem %s2259_s26, 256  ;;  %p1862_p12 = scmp.lt.s32.totalorder %s2259_s26, %s2259_s26 }
  0x3d   : > { %p1855_p5 = scmp.ne.s32.totalorder %s2259_s26, %s1854_s23  ;;  %p1863_p0 = scmp.lt.s32.totalorder %s1854_s23, %s1854_s23 }
  0x3f   : > { %p1857_p7 = pnand %p1855_p5, %p2271_p13  ;;  %p1864_p1 = por %p1863_p0, %p1862_p12 }
  0x41   : > { %p1858_p9 = pneg %p1857_p7 }
  0x43   : > { %p1865_p4 = pnand %p1864_p1, %p1858_p9 }
  0x45   : > { %1868 = shalt.err (!%p1865_p4)
}
  0x46   : > { %1592 = dma.hbm_to_vmem [thread:$0]  (!%p2255_p11), %s2759_s3, 256, %s2259_s26, [#allocation9], %s2126_s29, %s2126_s29, %s2127_s15  }
  0x47   : > { %s1869_s16 = scalar_lea.hbm %s2763_s7, 256 }
  0x48   : > { %p1870_p6 = scmp.ne.s32.totalorder %s2763_s7, %s1869_s16  ;;  %p1876_p5 = scmp.lt.u32.totalorder %s1869_s16, %s2763_s7 }
  0x4a   : > { %p1872_p10 = pnand %p1870_p6, %p2271_p13 }
  0x4c   : > { %p1873_p3 = pneg %p1872_p10 }
  0x4e   : > { %p1878_p7 = pnand %p1876_p5, %p1873_p3 }
  0x50   : > { %1881 = shalt.err (!%p1878_p7)
}
  0x51   : > { %s1882_s23 = scalar_lea.vmem %s317_s28, 256  ;;  %p1890_p1 = scmp.lt.s32.totalorder %s317_s28, %s317_s28 }
  0x52   : > { %p1883_p9 = scmp.ne.s32.totalorder %s317_s28, %s1882_s23  ;;  %p1891_p4 = scmp.lt.s32.totalorder %s1882_s23, %s1882_s23 }
  0x54   : > { %p1885_p12 = pnand %p1883_p9, %p2271_p13  ;;  %p1892_p8 = por %p1891_p4, %p1890_p1 }
  0x56   : > { %p1886_p0 = pneg %p1885_p12 }
  0x58   : > { %p1893_p2 = pnand %p1892_p8, %p1886_p0 }
  0x5a   : > { %1896 = shalt.err (!%p1893_p2)
}
  0x5b   : > { %1595 = dma.hbm_to_vmem [thread:$0]  (!%p2255_p11), %s2763_s7, 256, %s317_s28, [#allocation12], %s2126_s29, %s2126_s29, %s2127_s15  }
  0x5c   : > { %s46_s30 = sadd.s32 1, %s2057_s11  ;;  %s39_s24 = sadd.s32 1, %s2065_s13 }
  0x5d   : > { %p53_p2 = scmp.ne.s32.totalorder %s2057_s11, %s2053_s10  ;;  %p41_p8 = scmp.ge.s32.totalorder %s39_s24, 2 }
  0x5e   : > { %p54_p13 = scmp.eq.s32.totalorder %s2069_s14, 0  ;;  %p2786_p6 = scmp.ne.s32.totalorder %s2779_s18, 0 }
  0x5f   : > { %p1607_p3 = scmp.lt.s32.totalorder %s2069_s14, 2  ;;  %s2820_s24 = smov (%p41_p8, %s39_s24), 0 }
  0x60   : > { %p2350_p10 = por %p2786_p6, %p53_p2  ;;  %p55_p5 = por %p54_p13, %p53_p2 }
  0x61   : > { %s333_s9 = sand.u32 1, %s2057_s11   ;;  %s43_s12 = ssub.s32 %s2065_s13, %s2820_s24 }
  0x62   : > { %p44_p7 = scmp.eq.s32.totalorder %s43_s12, 0  ;;  %s1415_s28 = sshll.u32 %s333_s9, 2 }
  0x63   : > { %s1416_s29 = sshll.u32 %s2065_s13, 6  ;;  %s337_s25 = scalar_lea.vmem [#allocation5], %s1415_s28 }
  0x64   : > { %s2362_s15 = scalar_select %p44_p7, %s2057_s11, %s46_s30  }
  0x65   : > { %s2367_s18 = scalar_lea.hbm %s2756_s0, %s1416_s29  ;;  %s344_s27 = sshll.u32 %s337_s25, 4  ;;  %s2369_s27 = int_to_ptr.vmem [resolvable:$true] %s344_s27 }
  0x66   : > { %p2373_p11 = pnand %p1607_p3, %p55_p5  ;;  %s334_s23 = scalar_lea.sflag [#allocation6], %s333_s9 }
  0x67   : > { %s1897_s26 = scalar_lea.hbm %s2367_s18, 64  ;;  %s1902_s12 = scalar_lea.hbm %s2756_s0, 128 }
  0x68   : > { %p1898_p9 = scmp.ne.s32.totalorder %s2367_s18, %s1897_s26  ;;  %p1899_p12 = pneg %p2373_p11 }
  0x69   : > { %p1903_p4 = scmp.lt.u32.totalorder %s2367_s18, %s2756_s0  ;;  %p1904_p2 = scmp.lt.u32.totalorder %s1902_s12, %s1897_s26 }
  0x6a   : > { %p1900_p0 = pnand %p1899_p12, %p1898_p9  ;;  %p1906_p13 = scmp.lt.u32.totalorder %s1897_s26, %s2367_s18 }
  0x6b   : > { %p1905_p8 = por %p1904_p2, %p1903_p4 }
  0x6c   : > { %p1901_p1 = pneg %p1900_p0 }
  0x6d   : > { %p1907_p6 = por %p1906_p13, %p1905_p8 }
  0x6f   : > { %p1908_p3 = pnand %p1907_p6, %p1901_p1 }
  0x71   : > { %1911 = shalt.err (!%p1908_p3)
}
  0x72   : > { %s1912_s9 = scalar_lea.vmem %s2369_s27, 64  ;;  %s2128_s16 = smov [#allocation5]  }
  0x73   : > { %p1913_p5 = scmp.ne.s32.totalorder %s2369_s27, %s1912_s9  ;;  %s1917_s22 = sshll.u32 %s2128_s16, 4  ;;  %s1918_s22 = int_to_ptr.vmem [resolvable:$false] %s1917_s22 }
  0x74   : > { %s1919_s25 = scalar_lea.vmem %s1918_s22, 128  ;;  %p1920_p0 = scmp.lt.s32.totalorder %s2369_s27, %s1918_s22 }
  0x75   : > { %p1915_p7 = pnand %p1913_p5, %p1899_p12  ;;  %p1921_p4 = scmp.lt.s32.totalorder %s1919_s25, %s1912_s9 }
  0x77   : > { %p1916_p9 = pneg %p1915_p7  ;;  %p1922_p2 = por %p1921_p4, %p1920_p0 }
  0x79   : > { %p1923_p8 = pnand %p1922_p2, %p1916_p9 }
  0x7b   : > { %1926 = shalt.err (!%p1923_p8)
}
  0x7c   : > { %1599 = dma.hbm_to_vmem [thread:$0]  (!%p2373_p11), %s2367_s18, 64, %s2369_s27, %s334_s23  }
  0x7d   : > { %p2789_p1 = scmp.ne.s32.totalorder %s2783_s21, 0 }
  0x7e   : > { %s2405_s26 = sand.u32 (!%p2789_p1), 1, %s2053_s10   ;;  %p2790_p12 = scmp.ne.s32.totalorder (!%p2789_p1), %s2780_s19, 0 }
  0x7f   : > { %353 = sbr.rel (%p2789_p1) target bundleno = 1777 (0x6f1), region = 56  ;;  %s1418_s2 = sshll.u32 (!%p2789_p1), %s2405_s26, 2 }
  0x80   : > { %s356_s30 = scalar_lea.sflag (!%p2789_p1), [#allocation6], %s2405_s26  ;;  %s2411_s12 = scalar_lea.vmem (!%p2789_p1), [#allocation5], %s1418_s2 }
  0x86   : > { %2032 = dma.done.wait (%p2790_p12), %s356_s30, 64  }
  0x87   : > { %2034 = vsyncadd (%p2790_p12), %s356_s30, 4294967232  ;;  %p2791_p11 = scmp.ne.s32.totalorder %s2778_s17, 0 }
  0x89   : > { %2036 = dma.done.wait (%p2791_p11), [#allocation9], 512  }
  0x8a   : > { %2038 = vsyncadd (%p2791_p11), [#allocation9], 4294966784 }
  0x8b   : > { %2040 = dma.done.wait (%p2791_p11), [#allocation12], 256  }
  0x8c   : > { %2042 = vsyncadd (%p2791_p11), [#allocation12], 4294967040  ;;  %v2129_v0 = vmov 0.0   ;;  %vm2130_vm0 = vmmov 0   ;;  %v1779_v1 = vld [vmem:[#allocation10] sm:$0xff]   ;;  %v1780_v2 = vld [vmem:[#allocation10 + $0x8] sm:$0xff]   ;;  %v622_v9 = vlaneseq }
  0x8d   : > { %1490 = vmatprep.subr.bf16.mxu0 %v2129_v0  ;;  %1498 = vmatprep.subr.bf16.mxu1 %v2129_v0  ;;  %v1781_v3 = vld [vmem:[%s2761_s5] sm:$0xff]   ;;  %v1783_v4 = vld [vmem:[%s2761_s5 + $0x8] sm:$0xff]   ;;  %vm435_vm1 = vcmask 261120   ;;  %vm543_vm2 = vcmask 257024   ;;  %s2792_s16 = sld [smem:[#allocation21_spill]]  ;;  %s2467_s22 = scalar_lea.vmem [#allocation13], %s1418_s2 }
  0x8e   : > { %1494 = vmatprep.mubr.msk.bf16.mxu0 %vm2130_vm0, %v2129_v0  ;;  %1502 = vmatprep.mubr.msk.bf16.mxu1 %vm2130_vm0, %v2129_v0  ;;  %v411_v5 = vld [vmem:[%s2411_s12] sm:$0xf]  ;;  %v1782_v6 = vld [vmem:[#allocation8] sm:$0xff]   ;;  %v1784_v7 = vld [vmem:[#allocation8 + $0x8] sm:$0xff]   ;;  %v2448_v10 = vshrl.u32 %v622_v9, 7  ;;  %v2450_v11 = vand.u32 127, %v622_v9 }
  0x8f   : > { %1491 = vmatpush3.bf16.msra.mxu0 %v1779_v1  ;;  %1499 = vmatpush3.bf16.msra.mxu1 %v1781_v3  ;;  %v552_v8 = vld [vmem:[%s2411_s12] sm:$0xf]  ;;  %v2469_v34 = vmov 0.0   ;;  %v2471_v35 = vmov 0.0   ;;  %v2473_v36 = vmov 0.0   ;;  %v2475_v37 = vmov 0.0  }
  0x90   : > { %1492 = vmatprep.subr.bf16.mxu0 %v2129_v0  ;;  %1500 = vmatprep.subr.bf16.mxu1 %v2129_v0  ;;  %v1423_v12 = vld [vmem:[%s2760_s4] ss:$0 sm:$0xff]  ;;  %v2477_v38 = vmov 0.0   ;;  %v2479_v39 = vmov 0.0   ;;  %v2481_v40 = vmov 0.0   ;;  %v2483_v41 = vmov 0.0  }
  0x91   : > { %v1427_v14 = vld [vmem:[%s2762_s6] ss:$0 sm:$0xff]  ;;  %v2485_v42 = vmov -1e+30   ;;  %v2487_v43 = vmov -1e+30  }
  0x92   : > { %v2489_v44 = vmov -1e+30   ;;  %v2491_v45 = vmov -1e+30   ;;  %s2493_s25 = smov 0  }
  0x93   : > { %1493 = vmatpush3.bf16.msra.mxu0 %v1780_v2  ;;  %1501 = vmatpush3.bf16.msra.mxu1 %v1783_v4  ;;  %v1431_v26 = vld [vmem:[%s2792_s16] ss:$0 sm:$0xff] }
  0x94   : > { %1506 = vmatprep.subr.bf16.mxu0 %v2129_v0 }
  0x96   : > { %1495 = vmatmul.mubr.msk.bf16.vlgmr.msra.gmra.mrb[0].mxu0 %vm435_vm1, %v411_v5  ;;  %1503 = vmatmul.mubr.msk.bf16.vlgmr.msra.gmra.mrb[0].mxu1 %vm435_vm1, %v411_v5 }
  0x97   : > { %1507 = vmatpush3.bf16.msra.mxu0 %v1782_v6  ;;  %1510 = vmatprep.mubr.msk.bf16.mxu0 %vm2130_vm0, %v2129_v0 }
  0x98   : > { %1508 = vmatprep.subr.bf16.mxu0 %v2129_v0 }
  0x9b   : > { %1509 = vmatpush3.bf16.msra.mxu0 %v1784_v7 }
  0x9e   : > { %1511 = vmatmul.mubr.msk.bf16.vlgmr.msra.gmra.mrb[4].mxu0 %vm435_vm1, %v552_v8 }
 0x169   : > { %v473_v13 = vpop.f32.mrb[0].mxu0  ;;  %v536_v18 = vpop.f32.mrb[0].mxu1 }
 0x16a   : > { %v474_v15 = vadd.f32 %v1423_v12, %v473_v13  ;;  %v1496_v16 = vpop.f32.mrb[1].mxu0  ;;  %v537_v21 = vadd.f32 %v1427_v14, %v536_v18  ;;  %v1504_v22 = vpop.f32.mrb[1].mxu1 }
 0x16b   : > { %v476_v17 = vpop.f32.mrb[2].mxu0  ;;  %v539_v23 = vpop.f32.mrb[2].mxu1 }
 0x16c   : > { %v542_v19 = vpack.c.bf16 %v474_v15, %v474_v15  ;;  %v1497_v20 = vpop.f32.mrb[3].mxu0  ;;  %v545_v24 = vpack.c.bf16 %v537_v21, %v537_v21  ;;  %v1505_v25 = vpop.f32.mrb[3].mxu1 }
 0x16e   : > { %544 = vst.msk [vmem:[#allocation2] sm:$0xf] %vm543_vm2, %v542_v19  ;;  %546 = vst.msk [vmem:[#allocation3] sm:$0xf] %vm543_vm2, %v545_v24 }
 0x171   : > { %v614_v27 = vpop.f32.mrb[4].mxu0 }
 0x172   : > { %v615_v28 = vadd.f32 %v1431_v26, %v614_v27  ;;  %v1512_v29 = vpop.f32.mrb[5].mxu0 }
 0x173   : > { %v617_v30 = vpop.f32.mrb[6].mxu0 }
 0x174   : > { %v620_v31 = vmul.f32 0.70710677, %v615_v28  ;;  %v1513_v32 = vpop.f32.mrb[7].mxu0 }
 0x176   : > { %v2463_v33 = vpack.c.bf16 %v620_v31, %v620_v31 }
 0x177 LB: >> { %v2131_v46 = vmov 0.0   ;;  %vm2132_vm3 = vmmov 0   ;;  %s1435_s2 = sshll.u32 %s2121_s25, 3  ;;  %vm659_vm4 = vcmask 64512   ;;  %s2133_s21 = smov 120   ;;  %vm727_vm6 = vcmask 1043456   ;;  %s2121_s25 = sphi %s2493_s25, %s632_s25   ;;  %v2117_v45 = vphi %v2491_v45, %v2806_v45   ;;  %v2113_v44 = vphi %v2489_v44, %v2805_v44   ;;  %v2109_v43 = vphi %v2487_v43, %v2804_v43   ;;  %v2105_v42 = vphi %v2485_v42, %v2803_v42   ;;  %v2101_v41 = vphi %v2483_v41, %v2802_v41   ;;  %v2097_v40 = vphi %v2481_v40, %v2801_v40   ;;  %v2093_v39 = vphi %v2479_v39, %v2800_v39   ;;  %v2089_v38 = vphi %v2477_v38, %v2799_v38   ;;  %v2085_v37 = vphi %v2475_v37, %v2798_v37   ;;  %v2081_v36 = vphi %v2473_v36, %v2797_v36   ;;  %v2077_v35 = vphi %v2471_v35, %v2796_v35   ;;  %v2073_v34 = vphi %v2469_v34, %v2795_v34  }
 0x178   : >> { %1514 = vmatprep.subr.bf16.mxu0 %v2131_v46  ;;  %1516 = vmatprep.mubr.msk.bf16.mxu0 %vm2132_vm3, %v2131_v46  ;;  %s2541_s30 = sshra.s32 %s1435_s2, 3  ;;  %s2134_s17 = smov 112   ;;  %v656_v50 = vstv %s1435_s2 }
 0x179   : >> { %1520 = vmatprep.subr.bf16.mxu1 %v2131_v46  ;;  %1522 = vmatprep.mubr.msk.bf16.mxu1 %vm2132_vm3, %v2131_v46  ;;  %s1436_s12 = sshll.u32 %s2541_s30, 2  ;;  %s2135_s18 = smov 104   ;;  %v2561_v51 = vadd.s32 %v656_v50, %v2450_v11 }
 0x17a   : >> { %s651_s19 = scalar_lea.vmem [#allocation2], %s1436_s12  ;;  %773 = vrot.lane.b32.xlu1 %v2463_v33, %s2133_s21  ;;  %s654_s27 = scalar_lea.vmem [#allocation3], %s1436_s12 }
 0x17b   : >> { %v652_v47 = vld [vmem:[%s651_s19] sm:$0xf]  ;;  %vm658_vm5 = vcmp.ge.s32.totalorder %v2448_v10, %v2561_v51  ;;  %s632_s25 = sadd.s32 1, %s2121_s25  }
 0x17c   : >> { %v664_v48 = vsel %vm659_vm4, %v652_v47, 0  ;;  %v1440_v49 = vcombine.low %v652_v47, %v652_v47  ;;  %v655_v58 = vld [vmem:[%s654_s27] sm:$0xf]  ;;  %p2655_p13 = scmp.ge.s32.totalorder %s632_s25, 1 }
 0x17d   : >> { %1515 = vmatpush3.bf16.xpose.msra.mxu0 %v664_v48  ;;  %v729_v59 = vsel %vm727_vm6, %v655_v58, 0  ;;  %v1442_v47 = vcombine.low %v655_v58, %v655_v58  ;;  %s2136_s23 = smov (%p2655_p13), 8   ;;  %vm1133_vm7 = vcmask (%p2655_p13), 60416   ;;  %s2137_s28 = smov (%p2655_p13), 24   ;;  %vm1144_vm8 = vcmask (%p2655_p13), 126016  }
 0x17e   : >> { %1532 = vmatprep.subr.bf16.mxu0 %v2131_v46  ;;  %898 = vrot.lane.b32.xlu1 %v1440_v49, %s2134_s17  ;;  %s2807_s29 = sld [smem:[#allocation19_spill]] (%p2655_p13)  ;;  %s2138_s9 = smov (%p2655_p13), 16   ;;  %vm1155_vm9 = vcmask (%p2655_p13), 191616   ;;  %vm1166_vm10 = vcmask (%p2655_p13), 257216  }
 0x17f   : >> { %1521 = vmatpush3.bf16.msra.mxu1 %v729_v59  ;;  %s2808_s2 = sld [smem:[#allocation22_spill]] (%p2655_p13)  ;;  %s1253_s12 = sshll.u32 (%p2655_p13), %s2467_s22, 4  ;;  %s2707_s12 = int_to_ptr.vmem [resolvable:$true] %s1253_s12 }
 0x180   : >> { %1526 = vmatprep.subr.bf16.mxu1 %v2131_v46  ;;  %s1239_s27 = scalar_lea.sflag (%p2655_p13), [#allocation7], %s2405_s26  ;;  %s1927_s20 = scalar_lea.vmem (%p2655_p13), %s2707_s12, 64 }
 0x181   : > { %p1928_p6 = scmp.ne.s32.totalorder (%p2655_p13), %s2707_s12, %s1927_s20 }
 0x182   : >> { %896 = vrot.lane.b32.xlu1 %v2463_v33, %s2134_s17 }
 0x183   : > { %p1929_p3 = pnand (%p2655_p13), %p1928_p6, %p2350_p10 }
 0x184   : >> { %1517 = vmatmul.mubr.msk.bf16.vlgmr.msra.gmra.mrb[0].mxu0 %vm659_vm4, %v2463_v33  ;;  %s1456_s30 = sshll.u32 (%p2655_p13), %s2807_s29, 6 }
 0x185   : >> { %1534 = vmatprep.mubr.msk.bf16.mxu0 %vm2132_vm3, %v2131_v46  ;;  %p1930_p5 = pneg (%p2655_p13), %p1929_p3 }
 0x186   : >> { %1015 = vrot.lane.b32.xlu1 %v1440_v49, %s2135_s18 }
 0x18a   : >> { %1013 = vrot.lane.b32.xlu1 %v2463_v33, %s2135_s18 }
 0x1ec   : >> { %v774_v4 = vpop.permute.xlu1 %773 }
 0x1f0   : >> { %v899_v7 = vpop.permute.xlu1 %898 }
 0x1f1   : >> { %v904_v8 = vsel %vm659_vm4, %v899_v7, 0 }
 0x1f4   : >> { %v897_v9 = vpop.permute.xlu1 %896 }
 0x1f8   : >> { %v1016_v12 = vpop.permute.xlu1 %1015 }
 0x1f9   : >> { %v1021_v13 = vsel %vm659_vm4, %v1016_v12, 0 }
 0x1fc   : >> { %v1014_v14 = vpop.permute.xlu1 %1013 }
 0x257   : >> { %v700_v52 = vpop.f32.mrb[0].mxu0 }
 0x258   : >> { %v706_v53 = vsel %vm658_vm5, %v700_v52, -1e+30  ;;  %v1518_v54 = vpop.f32.mrb[1].mxu0 }
 0x259   : >> { %v703_v55 = vpop.f32.mrb[2].mxu0  ;;  %v707_v56 = vsel %vm659_vm4, %v706_v53, -inf }
 0x25a   : >> { %708 = vmax.xlane.f32.xlu0 %v707_v56  ;;  %v1519_v57 = vpop.f32.mrb[3].mxu0 }
 0x270   : >> { %778 = vrot.lane.b32.xlu0 %v1440_v49, %s2133_s21 }
 0x2e7   : >> { %v709_v60 = vpop.xlane.xlu0 %708 }
 0x2e8   : >> { %v2575_v61 = vmax.f32 %v2117_v45, %v709_v60  }
 0x2ea   : >> { %v711_v62 = vsub.f32 %v2117_v45, %v2575_v61  ;;  %v714_v63 = vsub.f32 %v706_v53, %v2575_v61 }
 0x2eb   : >> { %v779_v2 = vpop.permute.xlu0 %778 }
 0x2ec   : >> { %v715_v1 = vmul.f32 1.442695, %v714_v63  ;;  %v784_v5 = vsel %vm659_vm4, %v779_v2, 0  ;;  %v712_v15 = vmul.f32 1.442695, %v711_v62 }
 0x2ee   : >> { %1787 = vpow2.f32 %v715_v1 }
 0x2ef   : >> { %1789 = vpow2.f32 %v712_v15 }
 0x2f8   : >> { %v1788_v3 = vpop.eup %1787 }
 0x2f9   : >> { %v723_v6 = vpack.c.bf16 %v1788_v3, %v1788_v3  ;;  %v2595_v16 = vpop.eup %1789  ;;  %v718_v55 = vsel %vm659_vm4, %v1788_v3, 0.0 }
 0x2fa   : >> { %v722_v17 = vmul.f32 %v2085_v37, %v2595_v16 }
 0x2fb   : >> { %1523 = vmatmul.mubr.msk.bf16.vlgmr.msra.gmra.mrb[0].mxu1 %vm659_vm4, %v723_v6 }
 0x2fc   : >> { %1527 = vmatpush3.bf16.xpose.msra.mxu1 %v784_v5  ;;  %1528 = vmatprep.mubr.msk.bf16.mxu1 %vm2132_vm3, %v2131_v46 }
 0x2fd   : >> { %1538 = vmatprep.subr.bf16.mxu1 %v2131_v46 }
 0x303   : >> { %1529 = vmatmul.mubr.msk.bf16.vlgmr.msra.gmra.mrb[4].mxu1 %vm659_vm4, %v774_v4 }
 0x304   : >> { %1539 = vmatpush3.bf16.xpose.msra.mxu1 %v904_v8  ;;  %1540 = vmatprep.mubr.msk.bf16.mxu1 %vm2132_vm3, %v2131_v46 }
 0x305   : >> { %1550 = vmatprep.subr.bf16.mxu1 %v2131_v46 }
 0x30b   : >> { %1541 = vmatmul.mubr.msk.bf16.vlgmr.msra.gmra.mrb[8].mxu1 %vm659_vm4, %v897_v9 }
 0x30c   : >> { %1551 = vmatpush3.bf16.xpose.msra.mxu1 %v1021_v13  ;;  %1552 = vmatprep.mubr.msk.bf16.mxu1 %vm2132_vm3, %v2131_v46 }
 0x313   : >> { %1553 = vmatmul.mubr.msk.bf16.vlgmr.msra.gmra.mrb[12].mxu1 %vm659_vm4, %v1014_v14 }
 0x3ce   : >> { %v765_v18 = vpop.f32.mrb[0].mxu1 }
 0x3cf   : >> { %v2599_v37 = vadd.f32 %v765_v18, %v722_v17   ;;  %v1524_v20 = vpop.f32.mrb[1].mxu1 }
 0x3d0   : >> { %v768_v21 = vpop.f32.mrb[2].mxu1 }
 0x3d1   : >> { %v2793_v19 = vmov %v2599_v37  ;;  %v1525_v22 = vpop.f32.mrb[3].mxu1 }
 0x3d2   : >> { %v717_v22 = vmul.f32 %v2101_v41, %v2595_v16 }
 0x3d6   : >> { %v820_v23 = vpop.f32.mrb[4].mxu1 }
 0x3d7   : >> { %v826_v24 = vsel %vm658_vm5, %v820_v23, -1e+30  ;;  %v1530_v25 = vpop.f32.mrb[5].mxu1 }
 0x3d8   : >> { %v823_v26 = vpop.f32.mrb[6].mxu1  ;;  %v827_v27 = vsel %vm659_vm4, %v826_v24, -inf }
 0x3d9   : >> { %828 = vmax.xlane.f32.xlu1 %v827_v27  ;;  %v1531_v28 = vpop.f32.mrb[7].mxu1 }
 0x3de   : >> { %v940_v29 = vpop.f32.mrb[8].mxu1 }
 0x3df   : >> { %v946_v30 = vsel %vm658_vm5, %v940_v29, -1e+30  ;;  %v1542_v31 = vpop.f32.mrb[9].mxu1 }
 0x3e0   : >> { %v947_v32 = vsel %vm659_vm4, %v946_v30, -inf  ;;  %v943_v37 = vpop.f32.mrb[10].mxu1 }
 0x3e1   : >> { %948 = vmax.xlane.f32.xlu0 %v947_v32  ;;  %v1543_v45 = vpop.f32.mrb[11].mxu1 }
 0x3e6   : >> { %v1057_v48 = vpop.f32.mrb[12].mxu1 }
 0x3e7   : >> { %v1554_v49 = vpop.f32.mrb[13].mxu1  ;;  %v1063_v53 = vsel %vm658_vm5, %v1057_v48, -1e+30 }
 0x3e8   : >> { %v1060_v50 = vpop.f32.mrb[14].mxu1  ;;  %v1064_v54 = vsel %vm659_vm4, %v1063_v53, -inf }
 0x3e9   : >> { %v1555_v52 = vpop.f32.mrb[15].mxu1 }
 0x3ea   : >> { %964 = vrot.lane.b32.xlu1 %v1442_v47, %s2134_s17  ;;  %s2809_s17 = sld [smem:[#allocation23_spill]] (%p2655_p13) }
 0x3f7   : >> { %847 = vrot.lane.b32.xlu0 %v1442_v47, %s2133_s21 }
 0x40e   : >> { %1065 = vmax.xlane.f32.xlu1 %v1064_v54 }
 0x416   : >> { %719 = vadd.xlane.f32.xlu0 %v718_v55 }
 0x41f   : >> { %1081 = vrot.lane.b32.xlu1 %v1442_v47, %s2135_s18  ;;  %s2705_s18 = scalar_lea.hbm (%p2655_p13), %s2809_s17, %s1456_s30 }
 0x466   : >> { %v829_v56 = vpop.xlane.xlu1 %828 }
 0x467   : >> { %v2618_v57 = vmax.f32 %v2113_v44, %v829_v56  }
 0x469   : >> { %v831_v58 = vsub.f32 %v2113_v44, %v2618_v57  ;;  %v834_v59 = vsub.f32 %v826_v24, %v2618_v57 }
 0x46a   : >> { %v965_v5 = vpop.permute.xlu1 %964 }
 0x46b   : >> { %v835_v60 = vmul.f32 1.442695, %v834_v59  ;;  %v970_v8 = vsel %vm727_vm6, %v965_v5, 0  ;;  %v1804_v5 = vld [vmem:[#allocation11 + $0x8] sm:$0xff] (%p2655_p13)  }
 0x46d   : >> { %1791 = vpow2.f32 %v835_v60 }
 0x46e   : >> { %v949_v51 = vpop.xlane.xlu0 %948 }
 0x46f   : >> { %v2624_v62 = vmax.f32 %v2109_v43, %v949_v51  }
 0x471   : >> { %v951_v63 = vsub.f32 %v2109_v43, %v2624_v62  ;;  %v954_v1 = vsub.f32 %v946_v30, %v2624_v62 }
 0x472   : >> { %v848_v2 = vpop.permute.xlu0 %847 }
 0x473   : >> { %v955_v3 = vmul.f32 1.442695, %v954_v1  ;;  %v853_v4 = vsel %vm727_vm6, %v848_v2, 0  ;;  %v952_v27 = vmul.f32 1.442695, %v951_v63 }
 0x474   : >> { %1533 = vmatpush3.bf16.msra.mxu0 %v853_v4 }
 0x475   : >> { %1544 = vmatprep.subr.bf16.mxu0 %v2131_v46  ;;  %1793 = vpow2.f32 %v955_v3 }
 0x477   : >> { %v1792_v44 = vpop.eup %1791 }
 0x478   : >> { %v838_v6 = vsel %vm659_vm4, %v1792_v44, 0.0  ;;  %v843_v7 = vpack.c.bf16 %v1792_v44, %v1792_v44 }
 0x479   : >> { %839 = vadd.xlane.f32.xlu1 %v838_v6 }
 0x47a   : >> { %1535 = vmatmul.mubr.msk.bf16.vlgmr.msra.gmra.mrb[4].mxu0 %vm659_vm4, %v843_v7 }
 0x47b   : >> { %1545 = vmatpush3.bf16.msra.mxu0 %v970_v8  ;;  %1546 = vmatprep.mubr.msk.bf16.mxu0 %vm2132_vm3, %v2131_v46 }
 0x47c   : >> { %1556 = vmatprep.subr.bf16.mxu0 %v2131_v46 }
 0x47f   : >> { %v1794_v43 = vpop.eup %1793 }
 0x480   : >> { %v958_v9 = vsel %vm659_vm4, %v1794_v43, 0.0  ;;  %v963_v12 = vpack.c.bf16 %v1794_v43, %v1794_v43  ;;  %v2804_v43 = vmov %v2624_v62  ;;  %v1803_v62 = vld [vmem:[#allocation11] sm:$0xff] (%p2655_p13)  }
 0x481   : >> { %959 = vadd.xlane.f32.xlu0 %v958_v9 }
 0x482   : >> { %1547 = vmatmul.mubr.msk.bf16.vlgmr.msra.gmra.mrb[8].mxu0 %vm659_vm4, %v963_v12 }
 0x483   : >> { %1558 = vmatprep.mubr.msk.bf16.mxu0 %vm2132_vm3, %v2131_v46 }
 0x49b   : >> { %v1066_v13 = vpop.xlane.xlu1 %1065 }
 0x49c   : >> { %v1067_v14 = vmax.f32 %v2105_v42, %v1066_v13   ;;  %v1451_v13 = vld [vmem:[%s2808_s2] ss:$0 sm:$0xff] (%p2655_p13) }
 0x49e   : >> { %v1068_v15 = vsub.f32 %v2105_v42, %v1067_v14  ;;  %v1071_v17 = vsub.f32 %v1063_v53, %v1067_v14  ;;  %v832_v42 = vmul.f32 1.442695, %v831_v58 }
 0x49f   : >> { %v1082_v18 = vpop.permute.xlu1 %1081 }
 0x4a0   : >> { %v1072_v20 = vmul.f32 1.442695, %v1071_v17  ;;  %v1087_v21 = vsel %vm727_vm6, %v1082_v18, 0  ;;  %v1069_v37 = vmul.f32 1.442695, %v1068_v15 }
 0x4a1   : >> { %1557 = vmatpush3.bf16.msra.mxu0 %v1087_v21 }
 0x4a2   : >> { %1795 = vpow2.f32 %v1072_v20  ;;  %1562 = vmatprep.subr.bf16.mxu0 (%p2655_p13), %v2129_v0 }
 0x4a3   : >> { %v720_v23 = vpop.xlane.xlu0 %719  ;;  %1797 = vpow2.f32 %v832_v42  ;;  %v2803_v42 = vmov %v1067_v14 }
 0x4a4   : >> { %v721_v24 = vadd.f32 %v720_v23, %v717_v22   ;;  %1799 = vpow2.f32 %v952_v27 }
 0x4a5   : >> { %1801 = vpow2.f32 %v1069_v37  ;;  %v2798_v37 = vmov %v2793_v19 }
 0x4ac   : >> { %v1796_v25 = vpop.eup %1795 }
 0x4ad   : >> { %v1075_v46 = vsel %vm659_vm4, %v1796_v25, 0.0  ;;  %v1080_v26 = vpack.c.bf16 %v1796_v25, %v1796_v25  ;;  %v1798_v28 = vpop.eup %1797 }
 0x4ae   : >> { %1076 = vadd.xlane.f32.xlu0 %v1075_v46  ;;  %v837_v29 = vmul.f32 %v2097_v40, %v1798_v28  ;;  %v1800_v41 = vpop.eup %1799  ;;  %v842_v52 = vmul.f32 %v2081_v36, %v1798_v28 }
 0x4af   : >> { %1559 = vmatmul.mubr.msk.bf16.vlgmr.msra.gmra.mrb[12].mxu0 %vm659_vm4, %v1080_v26  ;;  %v957_v16 = vmul.f32 %v2093_v39, %v1800_v41  ;;  %v1802_v45 = vpop.eup %1801  ;;  %v962_v58 = vmul.f32 %v2077_v35, %v1800_v41  ;;  %v2802_v41 = vmov %v721_v24 }
 0x4b0   : >> { %v1074_v48 = vmul.f32 %v2089_v38, %v1802_v45  ;;  %v1079_v1 = vmul.f32 %v2073_v34, %v1802_v45  ;;  %v2806_v45 = vmov %v2575_v61  ;;  %1566 = vmatprep.mubr.msk.bf16.mxu0 (%p2655_p13), %vm2130_vm0, %v2129_v0  ;;  %1563 = vmatpush3.bf16.msra.mxu0 (%p2655_p13), %v1803_v62 }
 0x4b1   : > { %1564 = vmatprep.subr.bf16.mxu0 (%p2655_p13), %v2129_v0 }
 0x4b4   : > { %1565 = vmatpush3.bf16.msra.mxu0 (%p2655_p13), %v1804_v5 }
 0x506   : >> { %v840_v30 = vpop.xlane.xlu1 %839 }
 0x507   : >> { %v841_v31 = vadd.f32 %v840_v30, %v837_v29  }
 0x509   : > { %1805 = vrcp.f32 (%p2655_p13), %v841_v31 }
 0x50e   : >> { %v960_v32 = vpop.xlane.xlu0 %959 }
 0x50f   : >> { %v961_v47 = vadd.f32 %v960_v32, %v957_v16  }
 0x511   : > { %1807 = vrcp.f32 (%p2655_p13), %v961_v47 }
 0x53b   : >> { %v1077_v49 = vpop.xlane.xlu0 %1076 }
 0x53c   : >> { %v1078_v50 = vadd.f32 %v1077_v49, %v1074_v48  }
 0x53e   : > { %1809 = vrcp.f32 (%p2655_p13), %v1078_v50 }
 0x53f   : > { %1811 = vrcp.f32 (%p2655_p13), %v721_v24 }
 0x54d   : >> { %v889_v53 = vpop.f32.mrb[4].mxu0 }
 0x54e   : >> { %v895_v54 = vadd.f32 %v889_v53, %v842_v52   ;;  %v1536_v55 = vpop.f32.mrb[5].mxu0 }
 0x54f   : >> { %v892_v40 = vpop.f32.mrb[6].mxu0 }
 0x550   : >> { %v1537_v56 = vpop.f32.mrb[7].mxu0  ;;  %v2797_v36 = vmov %v895_v54  ;;  %v2801_v40 = vmov %v841_v31 }
 0x555   : >> { %v1006_v59 = vpop.f32.mrb[8].mxu0 }
 0x556   : >> { %v1012_v60 = vadd.f32 %v1006_v59, %v962_v58   ;;  %v1548_v39 = vpop.f32.mrb[9].mxu0 }
 0x557   : >> { %v1009_v51 = vpop.f32.mrb[10].mxu0  ;;  %v2800_v39 = vmov %v961_v47 }
 0x558   : >> { %v1549_v63 = vpop.f32.mrb[11].mxu0  ;;  %v2796_v35 = vmov %v1012_v60 }
 0x580   : > { %634 = sbr.rel (!%p2655_p13) target bundleno = 375 (0x177), region = 127 }
 0x582   : >> { %v1123_v2 = vpop.f32.mrb[12].mxu0 }
 0x583   : >> { %v1129_v3 = vadd.f32 %v1123_v2, %v1079_v1   ;;  %v1560_v38 = vpop.f32.mrb[13].mxu0 }
 0x584   : >> { %v1126_v4 = vpop.f32.mrb[14].mxu0  ;;  %v2799_v38 = vmov %v1078_v50 }
 0x585   : >> { %v1561_v44 = vpop.f32.mrb[15].mxu0  ;;  %v2795_v34 = vmov %v1129_v3 }
 0x586   : >> { %v2805_v44 = vmov %v2618_v57  ;;  %v1806_v57 = vpop.eup (%p2655_p13), %1805 }
 0x587   : > { %v1808_v61 = vpop.eup %1807  ;;  %v1136_v6 = vmul.f32 %v1806_v57, %v895_v54 }
 0x588   : > { %v1810_v7 = vpop.eup %1809  ;;  %v1147_v8 = vmul.f32 %v1808_v61, %v1012_v60 }
 0x589   : > { %v1812_v10 = vpop.eup %1811  ;;  %v1459_v11 = vpack.c.bf16 %v1136_v6, %v1136_v6  ;;  %v1158_v33 = vmul.f32 %v1810_v7, %v1129_v3 }
 0x58a   : > { %v1131_v34 = vmul.f32 %v1812_v10, %v2793_v19  ;;  %v1460_v35 = vpack.c.bf16 %v1147_v8, %v1147_v8 }
 0x58b   : > { %1141 = vrot.lane.b32.xlu0 %v1459_v11, %s2136_s23  ;;  %v1461_v36 = vpack.c.bf16 %v1158_v33, %v1158_v33  ;;  %s2139_s23 = smov [#allocation13]  }
 0x58c   : > { %v1132_v43 = vpack.c.bf16 %v1131_v34, %v1131_v34 }
 0x58d   : > { %1163 = vrot.lane.b32.xlu1 %v1461_v36, %s2137_s28  ;;  %s1931_s28 = sshll.u32 %s2139_s23, 4  ;;  %s1932_s28 = int_to_ptr.vmem [resolvable:$false] %s1931_s28 }
 0x58e   : > { %1134 = vst.msk [vmem:[#allocation4] sm:$0xf] %vm1133_vm7, %v1132_v43  ;;  %s1933_s29 = scalar_lea.vmem %s1932_s28, 128  ;;  %p1934_p7 = scmp.lt.s32.totalorder %s2707_s12, %s1932_s28 }
 0x58f   : > { %1152 = vrot.lane.b32.xlu0 %v1460_v35, %s2138_s9  ;;  %p1935_p9 = scmp.lt.s32.totalorder %s1933_s29, %s1927_s20 }
 0x591   : > { %p1936_p0 = por %p1935_p9, %p1934_p7 }
 0x593   : > { %p1937_p4 = pnand %p1936_p0, %p1930_p5 }
 0x5fd   : > { %v1142_v0 = vpop.permute.xlu0 %1141 }
 0x5fe   : > { %1145 = vst.msk [vmem:[#allocation4] sm:$0xf] %vm1144_vm8, %v1142_v0 }
 0x5ff   : > { %v1164_v9 = vpop.permute.xlu1 %1163 }
 0x601   : > { %v1153_v19 = vpop.permute.xlu0 %1152 }
 0x602   : > { %1156 = vst.msk [vmem:[#allocation4] sm:$0xf] %vm1155_vm9, %v1153_v19 }
 0x603   : > { %1167 = vst.msk [vmem:[#allocation4] sm:$0xf] %vm1166_vm10, %v1164_v9 }
 0x60a   : > { %v1168_v12 = vld [vmem:[#allocation4] sm:$0xf] }
 0x60b   : > { %1567 = vmatmul.mubr.msk.bf16.vlgmr.msra.gmra.mrb[0].mxu0 %vm435_vm1, %v1168_v12 }
 0x6de   : > { %v1229_v14 = vpop.f32.mrb[0].mxu0 }
 0x6df   : > { %v1230_v15 = vadd.f32 %v1451_v13, %v1229_v14  ;;  %v1568_v17 = vpop.f32.mrb[1].mxu0 }
 0x6e0   : > { %v1232_v18 = vpop.f32.mrb[2].mxu0 }
 0x6e1   : > { %v1235_v20 = vpack.c.bf16 %v1230_v15, %v1230_v15  ;;  %v1569_v21 = vpop.f32.mrb[3].mxu0 }
 0x6e3   : > { %1237 = vst.msk [vmem:[%s2467_s22] sm:$0xf] %vm543_vm2, %v1235_v20 }
 0x6e4   : > { %1940 = shalt.err (!%p1937_p4)
}
 0x6e5   : > { %s1941_s26 = scalar_lea.hbm %s2705_s18, 64  ;;  %s1945_s16 = scalar_lea.hbm %s2809_s17, 128 }
 0x6e6   : > { %p1942_p2 = scmp.ne.s32.totalorder %s2705_s18, %s1941_s26  ;;  %p1946_p12 = scmp.lt.u32.totalorder %s2705_s18, %s2809_s17 }
 0x6e7   : > { %p1947_p11 = scmp.lt.u32.totalorder %s1945_s16, %s1941_s26  ;;  %p1949_p6 = scmp.lt.u32.totalorder %s1941_s26, %s2705_s18 }
 0x6e8   : > { %p1943_p8 = pnand %p1942_p2, %p2350_p10 }
 0x6e9   : > { %p1948_p13 = por %p1947_p11, %p1946_p12 }
 0x6ea   : > { %p1944_p1 = pneg %p1943_p8 }
 0x6eb   : > { %p1950_p3 = por %p1949_p6, %p1948_p13 }
 0x6ed   : > { %p1951_p5 = pnand %p1950_p3, %p1944_p1 }
 0x6ef   : > { %1954 = shalt.err (!%p1951_p5)
}
 0x6f0   : > { %1584 = dma.vmem_to_hbm [thread:$0]  (%p2350_p10), %s2707_s12, 64, %s2705_s18, %s1239_s27  }
 0x6f1 PF: > { %s2810_s30 = sld [smem:[#allocation18_spill]]  ;;  %s2811_s19 = sld [smem:[#allocation20_spill]] }
 0x6f2   : > { %p2813_p9 = scmp.ge.s32.totalorder %s2069_s14, 2 }
 0x6f7   : > { %s1265_s21 = sand.u32 1, %s2810_s30   ;;  %p2812_p7 = scmp.ne.s32.totalorder %s2811_s19, 0 }
 0x6f8   : > { %s1266_s20 = scalar_lea.sflag [#allocation7], %s1265_s21 }
 0x6f9   : > { %p1601_p0 = pnand %p2813_p9, %p2812_p7 }
 0x6fb   : > { %2044 = dma.done.wait (!%p1601_p0), %s1266_s20, 64  }
 0x6fc   : > { %2046 = vsyncadd (!%p1601_p0), %s1266_s20, 4294967232  ;;  %s27_s14 = sadd.s32 1, %s2069_s14   ;;  %s2814_s30 = smov %s2053_s10 }
 0x6fd   : > { %p24_p4 = scmp.ge.s32.totalorder %s27_s14, 4   ;;  %s2815_s10 = smov %s2057_s11 }
 0x6fe   : > { %s2816_s11 = smov %s2362_s15  ;;  %s2817_s12 = smov %s2065_s13 }
 0x6ff   : > { %s2818_s13 = smov %s2820_s24  ;;  %26 = sbr.rel (!%p24_p4) target bundleno = 12 (0xc), region = 138 }
 0x706   :  { %1271 = vsyncpa [#allocation6], 1 }
 0x707   :  { %1273 = vsyncpa [#allocation6 + $0x1], 1 }
 0x708   :  { %1274 = vsyncpa [#allocation9], 1 }
 0x709   :  { %1275 = vsyncpa [#allocation12], 1 }
 0x70a   :  { %1276 = vsyncpa [#allocation7], 1 }
 0x70b   :  { %1278 = vsyncpa [#allocation7 + $0x1], 1 }

</bundles_post_ra>
